<compile_context>
chip_gen: v7x
topology: tpu7x:2x2x1
jax: 0.10.0
libtpu: 0.0.40
codegen_flags: <defaults>
</compile_context>

<pallas_src>
import functools
import math

import jax
import jax.numpy as jnp
from jax import lax
from jax.experimental import pallas as pl
from jax.experimental.pallas import tpu as pltpu

LN_EPS = 1e-5  # nn.LayerNorm default eps


# --------------------------------------------------------------------------
# In-kernel helpers
# --------------------------------------------------------------------------
def _gelu(h, approx):
    if approx:
        # tanh-approx GELU: the transcendental goes to the EUP slot instead of
        # a VALU erf polynomial.  Slightly different numerics from nn.GELU().
        return jax.nn.gelu(h, approximate=True)
    # Exact erf GELU, matching nn.GELU() default numerics.
    return 0.5 * h * (1.0 + lax.erf(h * (1.0 / math.sqrt(2.0))))


def _layernorm_f32(x, gamma, beta):
    x = x.astype(jnp.float32)
    mean = jnp.mean(x, axis=-1, keepdims=True)
    var = jnp.mean(jnp.square(x - mean), axis=-1, keepdims=True)
    xn = (x - mean) * lax.rsqrt(var + LN_EPS)
    return xn * gamma.astype(jnp.float32) + beta.astype(jnp.float32)


# --------------------------------------------------------------------------
# Kernels
# --------------------------------------------------------------------------
def _ffn_resident_kernel(x_ref, gamma_ref, beta_ref, w1_ref, b1_ref, w2_ref,
                         b2_ref, o_ref, *, approx_gelu):
    """Weights fully VMEM-resident; grid only over row tiles."""
    xn = _layernorm_f32(x_ref[...], gamma_ref[...], beta_ref[...])
    xn_w = xn.astype(w1_ref.dtype)  # single cast, feeds the MXU

    h = jnp.dot(xn_w, w1_ref[...], preferred_element_type=jnp.float32)
    h = h + b1_ref[...].astype(jnp.float32)
    h = _gelu(h, approx_gelu)
    # TODO(synk): dropout1 is identity here (inference mode).

    y = jnp.dot(h.astype(w2_ref.dtype), w2_ref[...],
                preferred_element_type=jnp.float32)
    y = y + b2_ref[...].astype(jnp.float32)

    # Residual on the *normed* activations (module semantics).
    o_ref[...] = (xn + y).astype(o_ref.dtype)
    # TODO(synk): dropout2 is identity here (inference mode).


def _ffn_streamed_kernel(x_ref, gamma_ref, beta_ref, w1_ref, b1_ref, w2_ref,
                         b2_ref, o_ref, xn_ref, acc_ref, *, approx_gelu):
    """F axis streamed; LN output cached in weight dtype; f32 accumulator."""
    kf = pl.program_id(1)  # feed-forward (F) chunk index — reduction axis

    @pl.when(kf == 0)
    def _ln_once():
        xn = _layernorm_f32(x_ref[...], gamma_ref[...], beta_ref[...])
        # Cache already cast to the MXU/weight dtype: no per-F-chunk cast.
        xn_ref[...] = xn.astype(xn_ref.dtype)

    xn_w = xn_ref[...]

    # Linear1 chunk: (rows, D) @ (D, tf), f32 accumulation on the MXU.
    h = jnp.dot(xn_w, w1_ref[...], preferred_element_type=jnp.float32)
    h = h + b1_ref[...].astype(jnp.float32)
    h = _gelu(h, approx_gelu)
    # TODO(synk): dropout1 is identity here (inference mode).

    # Linear2 chunk: (rows, tf) @ (tf, D), accumulated over F chunks.
    part = jnp.dot(h.astype(w2_ref.dtype), w2_ref[...],
                   preferred_element_type=jnp.float32)

    @pl.when(kf == 0)
    def _acc_init():
        acc_ref[...] = part          # direct write: no zero-fill + add

    @pl.when(kf > 0)
    def _acc_add():
        acc_ref[...] += part

    @pl.when(kf == pl.num_programs(1) - 1)
    def _finalize():
        out = (xn_ref[...].astype(jnp.float32) + acc_ref[...]
               + b2_ref[...].astype(jnp.float32))
        o_ref[...] = out.astype(o_ref.dtype)
        # TODO(synk): dropout2 is identity here (inference mode).


# --------------------------------------------------------------------------
# Wrapper-side sizing helpers
# --------------------------------------------------------------------------
def _round_up(n, m):
    return -(-n // m) * m


def _vmem_budget_bytes():
    cap = 128 * 1024 * 1024  # v5e / v6e physical VMEM per TensorCore
    try:
        cap = int(pltpu.get_tpu_info().vmem_capacity_bytes)
    except Exception:
        pass
    # Leave headroom for compiler temporaries; on v7x (64 MiB physical) this
    # caps the scoped request at ~48 MiB instead of over-asking.
    return max(cap - 16 * 1024 * 1024, 16 * 1024 * 1024)


def _resident_need(row_tile, D, F, w_itm, x_itm):
    return (2 * row_tile * D * x_itm          # input tile, double-buffered
            + 2 * row_tile * D * x_itm        # output tile, double-buffered
            + 2 * 2 * D * F * w_itm           # W1^T + W2^T (worst-case 2 bufs)
            + row_tile * F * 4                # f32 hidden intermediate
            + 2 * row_tile * D * 4            # f32 LN output + result temps
            + 8 * (D + F) * 4)                # bias / gamma / beta vectors


def _streamed_need(row_tile, D, f_tile, w_itm, x_itm):
    return (2 * row_tile * D * x_itm          # input tile
            + 2 * row_tile * D * x_itm        # output tile
            + 2 * 2 * D * f_tile * w_itm      # W1^T + W2^T chunks, double-buf
            + row_tile * D * w_itm            # cached LN output (weight dtype)
            + row_tile * D * 4                # f32 Linear2 accumulator
            + row_tile * f_tile * 4           # f32 hidden intermediate
            + 8 * (D + f_tile) * 4)           # bias / gamma / beta vectors


def _pick_f_tile(F, budget, row_tile, D, w_itm, x_itm):
    """Largest lane-aligned F chunk that fits the VMEM budget."""
    for cand in (2048, 1024, 512, 256, 128):
        if F % cand == 0 and _streamed_need(row_tile, D, cand, w_itm, x_itm) <= budget:
            return cand
    return F  # awkward F: fall back to a single full-F chunk


# --------------------------------------------------------------------------
# Public API
# --------------------------------------------------------------------------
def prepare_ffn_params(gamma, beta, w1, b1, w2, b2, *, mxu_dtype=None):
    """One-time parameter prep (call at load time, NOT per forward).

    * transposes nn.Linear (out, in) weights to the (in, out) layout the
      kernel wants, so no per-call transpose copies,
    * reshapes vectors to (1, dim),
    * optionally casts weights once to `mxu_dtype` (e.g. jnp.bfloat16) to
      halve weight HBM traffic / use the native bf16 MXU path (off by default
      to preserve the module's f32 numerics).
    """
    wdt = jnp.dtype(mxu_dtype) if mxu_dtype is not None else w1.dtype
    return {
        "gamma": gamma.reshape(1, -1),
        "beta": beta.reshape(1, -1),
        "w1t": jnp.asarray(jnp.transpose(w1), dtype=wdt),  # (D, F)
        "b1": b1.reshape(1, -1),
        "w2t": jnp.asarray(jnp.transpose(w2), dtype=wdt),  # (F, D)
        "b2": b2.reshape(1, -1),
    }


def pre_layernorm_feedforward(src, params, *, row_tile=None, f_tile=None,
                              approx_gelu=False):
    """src: (batch, seq, d_model); params from prepare_ffn_params.
    Returns same shape/dtype as src (dropouts are inference-mode identity)."""
    B, S, D = src.shape
    w1t, w2t = params["w1t"], params["w2t"]
    F = w1t.shape[1]
    assert w1t.shape == (D, F) and w2t.shape == (F, D)

    N = B * S
    # Adaptive row tile: minimal padding for small/decode-style N, 512-row
    # tiles for large N (higher MXU intensity per weight byte, amortized
    # per-grid-step overhead).
    if row_tile is None:
        row_tile = _round_up(N, 8) if N <= 512 else 512
    assert row_tile % 8 == 0, "row_tile must be a multiple of 8"

    n_row_tiles = -(-N // row_tile)
    N_pad = n_row_tiles * row_tile
    x2d = src.reshape(N, D)
    if N_pad != N:
        x2d = jnp.pad(x2d, ((0, N_pad - N), (0, 0)))

    w_itm = jnp.dtype(w1t.dtype).itemsize
    x_itm = jnp.dtype(src.dtype).itemsize
    budget = _vmem_budget_bytes()

    # Prefer fully-resident weights (no F grid axis, no weight re-streaming
    # per row tile) whenever they fit the per-generation VMEM budget.
    use_resident = ((f_tile is None or f_tile == F)
                    and _resident_need(row_tile, D, F, w_itm, x_itm) <= budget)

    args = (x2d, params["gamma"], params["beta"], w1t, params["b1"], w2t,
            params["b2"])

    if use_resident:
        need = _resident_need(row_tile, D, F, w_itm, x_itm)
        vmem_limit = int(min(max(need + (8 << 20), 32 << 20), budget))
        kernel = functools.partial(_ffn_resident_kernel,
                                   approx_gelu=approx_gelu)
        const1 = lambda i: (0, 0)
        out2d = pl.pallas_call(
            kernel,
            out_shape=jax.ShapeDtypeStruct((N_pad, D), src.dtype),
            grid_spec=pltpu.PrefetchScalarGridSpec(
                num_scalar_prefetch=0,
                grid=(n_row_tiles,),
                in_specs=[
                    pl.BlockSpec((row_tile, D), lambda i: (i, 0)),  # x rows
                    pl.BlockSpec((1, D), const1),                   # gamma
                    pl.BlockSpec((1, D), const1),                   # beta
                    pl.BlockSpec((D, F), const1),                   # W1^T resident
                    pl.BlockSpec((1, F), const1),                   # b1
                    pl.BlockSpec((F, D), const1),                   # W2^T resident
                    pl.BlockSpec((1, D), const1),                   # b2
                ],
                out_specs=pl.BlockSpec((row_tile, D), lambda i: (i, 0)),
            ),
            compiler_params=pltpu.CompilerParams(
                dimension_semantics=("parallel",),
                vmem_limit_bytes=vmem_limit),
        )(*args)
        return out2d[:N].reshape(B, S, D)

    # ---- Streamed (F-tiled) path ----
    if f_tile is None:
        f_tile = _pick_f_tile(F, budget, row_tile, D, w_itm, x_itm)
    assert F % f_tile == 0, "dim_feedforward must be divisible by f_tile"
    n_f_tiles = F // f_tile

    need = _streamed_need(row_tile, D, f_tile, w_itm, x_itm)
    vmem_limit = int(min(max(need + (8 << 20), 32 << 20), budget))

    kernel = functools.partial(_ffn_streamed_kernel, approx_gelu=approx_gelu)
    const2 = lambda i, j: (0, 0)
    out2d = pl.pallas_call(
        kernel,
        out_shape=jax.ShapeDtypeStruct((N_pad, D), src.dtype),
        grid_spec=pltpu.PrefetchScalarGridSpec(
            num_scalar_prefetch=0,
            grid=(n_row_tiles, n_f_tiles),
            in_specs=[
                pl.BlockSpec((row_tile, D), lambda i, j: (i, 0)),   # x rows
                pl.BlockSpec((1, D), const2),                       # gamma
                pl.BlockSpec((1, D), const2),                       # beta
                pl.BlockSpec((D, f_tile), lambda i, j: (0, j)),     # W1^T chunk
                pl.BlockSpec((1, f_tile), lambda i, j: (0, j)),     # b1 chunk
                pl.BlockSpec((f_tile, D), lambda i, j: (j, 0)),     # W2^T chunk
                pl.BlockSpec((1, D), const2),                       # b2
            ],
            out_specs=pl.BlockSpec((row_tile, D), lambda i, j: (i, 0)),
            scratch_shapes=[
                pltpu.VMEM((row_tile, D), w1t.dtype),    # cached LN out (weight dtype)
                pltpu.VMEM((row_tile, D), jnp.float32),  # Linear2 accumulator
            ],
        ),
        compiler_params=pltpu.CompilerParams(
            dimension_semantics=("parallel", "arbitrary"),
            vmem_limit_bytes=vmem_limit),
    )(*args)
    return out2d[:N].reshape(B, S, D)


# --------------------------------------------------------------------------
# Reference + test harness
# --------------------------------------------------------------------------
def _reference(src, gamma, beta, w1, b1, w2, b2):
    x = src.astype(jnp.float32)
    mean = jnp.mean(x, axis=-1, keepdims=True)
    var = jnp.mean(jnp.square(x - mean), axis=-1, keepdims=True)
    xn = (x - mean) / jnp.sqrt(var + LN_EPS) * gamma + beta
    h = xn @ w1.T.astype(jnp.float32) + b1
    h = 0.5 * h * (1.0 + lax.erf(h / math.sqrt(2.0)))
    y = h @ w2.T.astype(jnp.float32) + b2
    return (xn + y).astype(src.dtype)


def _make_params(key, D, F):
    k = jax.random.split(key, 5)
    w1 = jax.random.normal(k[0], (F, D), dtype=jnp.float32) * (1.0 / math.sqrt(D))
    b1 = jax.random.normal(k[1], (F,), dtype=jnp.float32) * 0.01
    w2 = jax.random.normal(k[2], (D, F), dtype=jnp.float32) * (1.0 / math.sqrt(F))
    b2 = jax.random.normal(k[3], (D,), dtype=jnp.float32) * 0.01
    gamma = jnp.ones((D,), dtype=jnp.float32)
    beta = jnp.zeros((D,), dtype=jnp.float32)
    return gamma, beta, w1, b1, w2, b2


if __name__ == "__main__":
    key = jax.random.PRNGKey(0)

    # Test 1: small shapes consistent with the module
    # (batch=2, seq=8, d_model=32, dim_feedforward=64).  Exercises the
    # resident-weight path with a minimally padded (16-row) single row tile.
    B, S, D, F = 2, 8, 32, 64
    k_src, k_par, key = jax.random.split(key, 3)
    src = jax.random.normal(k_src, (B, S, D), dtype=jnp.float32)
    raw = _make_params(k_par, D, F)
    params = prepare_ffn_params(*raw)
    out = pre_layernorm_feedforward(src, params)
    out = jax.block_until_ready(out)
    ref = _reference(src, *raw)
    assert out.shape == src.shape and out.dtype == src.dtype
    assert jnp.allclose(out, ref, atol=1e-4, rtol=1e-4)

    # Test 2: force the streamed (F-tiled) path with multiple row tiles and
    # multiple F chunks (accumulator init / accumulate / finalize).
    B2, S2, D2, F2 = 2, 128, 128, 256
    k_src2, k_par2, key = jax.random.split(key, 3)
    src2 = jax.random.normal(k_src2, (B2, S2, D2), dtype=jnp.float32)
    raw2 = _make_params(k_par2, D2, F2)
    params2 = prepare_ffn_params(*raw2)
    out2 = pre_layernorm_feedforward(src2, params2, row_tile=128, f_tile=128)
    out2 = jax.block_until_ready(out2)
    ref2 = _reference(src2, *raw2)
    assert out2.shape == src2.shape and out2.dtype == src2.dtype
    assert jnp.allclose(out2, ref2, atol=1e-3, rtol=1e-3)

    print("KERNEL_OK")
</pallas_src>

<mosaic_0001>
module attributes {stable_mosaic.version = 11 : i64} {
  func.func @_ffn_resident_kernel(%arg0: i32, %arg1: memref<16x32xf32, #tpu.memory_space<vmem>>, %arg2: memref<1x32xf32, #tpu.memory_space<vmem>>, %arg3: memref<1x32xf32, #tpu.memory_space<vmem>>, %arg4: memref<32x64xf32, #tpu.memory_space<vmem>>, %arg5: memref<1x64xf32, #tpu.memory_space<vmem>>, %arg6: memref<64x32xf32, #tpu.memory_space<vmem>>, %arg7: memref<1x32xf32, #tpu.memory_space<vmem>>, %arg8: memref<16x32xf32, #tpu.memory_space<vmem>>) attributes {dimension_semantics = [#tpu.dimension_semantics<parallel>], iteration_bounds = array<i64: 1>, scalar_prefetch = 0 : i64, scratch_operands = 0 : i64, tpu.core_type = #tpu.core_type<tc>, window_params = [{transform_indices = @transform_0, window_bounds = array<i64: 16, 32>}, {pipeline_mode = #tpu.pipeline_mode<synchronous>, transform_indices = @transform_1, window_bounds = array<i64: 1, 32>}, {pipeline_mode = #tpu.pipeline_mode<synchronous>, transform_indices = @transform_2, window_bounds = array<i64: 1, 32>}, {pipeline_mode = #tpu.pipeline_mode<synchronous>, transform_indices = @transform_3, window_bounds = array<i64: 32, 64>}, {pipeline_mode = #tpu.pipeline_mode<synchronous>, transform_indices = @transform_4, window_bounds = array<i64: 1, 64>}, {pipeline_mode = #tpu.pipeline_mode<synchronous>, transform_indices = @transform_5, window_bounds = array<i64: 64, 32>}, {pipeline_mode = #tpu.pipeline_mode<synchronous>, transform_indices = @transform_6, window_bounds = array<i64: 1, 32>}, {transform_indices = @transform_7, window_bounds = array<i64: 16, 32>}]} {
    %c0 = arith.constant 0 : index
    %c0_0 = arith.constant 0 : index
    %0 = vector.load %arg1[%c0, %c0_0] : memref<16x32xf32, #tpu.memory_space<vmem>>, vector<16x32xf32>
    %c0_1 = arith.constant 0 : index
    %c0_2 = arith.constant 0 : index
    %1 = vector.load %arg2[%c0_1, %c0_2] : memref<1x32xf32, #tpu.memory_space<vmem>>, vector<1x32xf32>
    %c0_3 = arith.constant 0 : index
    %c0_4 = arith.constant 0 : index
    %2 = vector.load %arg3[%c0_3, %c0_4] : memref<1x32xf32, #tpu.memory_space<vmem>>, vector<1x32xf32>
    %cst = arith.constant dense<0.000000e+00> : vector<16xf32>
    %3 = vector.multi_reduction <add>, %0, %cst [1] : vector<16x32xf32> to vector<16xf32>
    %4 = vector.shape_cast %3 : vector<16xf32> to vector<16x1xf32>
    %cst_5 = arith.constant 3.200000e+01 : f32
    %5 = vector.broadcast %cst_5 : f32 to vector<16x1xf32>
    %6 = arith.divf %4, %5 : vector<16x1xf32>
    %7 = vector.broadcast %6 : vector<16x1xf32> to vector<16x32xf32>
    %8 = arith.subf %0, %7 : vector<16x32xf32>
    %9 = arith.mulf %8, %8 : vector<16x32xf32>
    %cst_6 = arith.constant dense<0.000000e+00> : vector<16xf32>
    %10 = vector.multi_reduction <add>, %9, %cst_6 [1] : vector<16x32xf32> to vector<16xf32>
    %11 = vector.shape_cast %10 : vector<16xf32> to vector<16x1xf32>
    %cst_7 = arith.constant 3.200000e+01 : f32
    %12 = vector.broadcast %cst_7 : f32 to vector<16x1xf32>
    %13 = arith.divf %11, %12 : vector<16x1xf32>
    %14 = vector.broadcast %6 : vector<16x1xf32> to vector<16x32xf32>
    %15 = arith.subf %0, %14 : vector<16x32xf32>
    %cst_8 = arith.constant 9.99999974E-6 : f32
    %16 = vector.broadcast %cst_8 : f32 to vector<16x1xf32>
    %17 = arith.addf %13, %16 : vector<16x1xf32>
    %18 = math.rsqrt %17 : vector<16x1xf32>
    %19 = vector.broadcast %18 : vector<16x1xf32> to vector<16x32xf32>
    %20 = arith.mulf %15, %19 : vector<16x32xf32>
    %21 = vector.broadcast %1 : vector<1x32xf32> to vector<16x32xf32>
    %22 = arith.mulf %20, %21 : vector<16x32xf32>
    %23 = vector.broadcast %2 : vector<1x32xf32> to vector<16x32xf32>
    %24 = arith.addf %22, %23 : vector<16x32xf32>
    %c0_9 = arith.constant 0 : index
    %c0_10 = arith.constant 0 : index
    %25 = vector.load %arg4[%c0_9, %c0_10] : memref<32x64xf32, #tpu.memory_space<vmem>>, vector<32x64xf32>
    %cst_11 = arith.constant dense<0.000000e+00> : vector<16x64xf32>
    %26 = tpu.matmul %24, %25, %cst_11 {dimension_numbers = #tpu.dot_dimension_numbers<[1], [0], [0], [1], [0, 0, 1, 1], [], []>} : vector<16x32xf32>, vector<32x64xf32>, vector<16x64xf32> -> vector<16x64xf32>
    %c0_12 = arith.constant 0 : index
    %c0_13 = arith.constant 0 : index
    %27 = vector.load %arg5[%c0_12, %c0_13] : memref<1x64xf32, #tpu.memory_space<vmem>>, vector<1x64xf32>
    %28 = vector.broadcast %27 : vector<1x64xf32> to vector<16x64xf32>
    %29 = arith.addf %26, %28 : vector<16x64xf32>
    %cst_14 = arith.constant 5.000000e-01 : f32
    %30 = vector.broadcast %cst_14 : f32 to vector<16x64xf32>
    %31 = arith.mulf %30, %29 : vector<16x64xf32>
    %cst_15 = arith.constant 0.707106769 : f32
    %32 = vector.broadcast %cst_15 : f32 to vector<16x64xf32>
    %33 = arith.mulf %29, %32 : vector<16x64xf32>
    %34 = math.erf %33 : vector<16x64xf32>
    %cst_16 = arith.constant 1.000000e+00 : f32
    %35 = vector.broadcast %cst_16 : f32 to vector<16x64xf32>
    %36 = arith.addf %35, %34 : vector<16x64xf32>
    %37 = arith.mulf %31, %36 : vector<16x64xf32>
    %c0_17 = arith.constant 0 : index
    %c0_18 = arith.constant 0 : index
    %38 = vector.load %arg6[%c0_17, %c0_18] : memref<64x32xf32, #tpu.memory_space<vmem>>, vector<64x32xf32>
    %cst_19 = arith.constant dense<0.000000e+00> : vector<16x32xf32>
    %39 = tpu.matmul %37, %38, %cst_19 {dimension_numbers = #tpu.dot_dimension_numbers<[1], [0], [0], [1], [0, 0, 1, 1], [], []>} : vector<16x64xf32>, vector<64x32xf32>, vector<16x32xf32> -> vector<16x32xf32>
    %c0_20 = arith.constant 0 : index
    %c0_21 = arith.constant 0 : index
    %40 = vector.load %arg7[%c0_20, %c0_21] : memref<1x32xf32, #tpu.memory_space<vmem>>, vector<1x32xf32>
    %41 = vector.broadcast %40 : vector<1x32xf32> to vector<16x32xf32>
    %42 = arith.addf %39, %41 : vector<16x32xf32>
    %43 = arith.addf %24, %42 : vector<16x32xf32>
    %c0_22 = arith.constant 0 : index
    %c0_23 = arith.constant 0 : index
    %44 = vector.load %arg8[%c0_22, %c0_23] : memref<16x32xf32, #tpu.memory_space<vmem>>, vector<16x32xf32>
    tpu.vector_store %arg8[%c0_22, %c0_23], %43 {strides = array<i32>} : memref<16x32xf32, #tpu.memory_space<vmem>>, vector<16x32xf32>,
    return
  }
  func.func @transform_0(%arg0: i32) -> (i32, i32) {
    %c0_i32 = arith.constant 0 : i32
    %c0_i32_0 = arith.constant 0 : i32
    return %arg0, %c0_i32 : i32, i32
  }
  func.func @transform_1(%arg0: i32) -> (i32, i32) {
    %c0_i32 = arith.constant 0 : i32
    %c0_i32_0 = arith.constant 0 : i32
    %c0_i32_1 = arith.constant 0 : i32
    return %c0_i32, %c0_i32_0 : i32, i32
  }
  func.func @transform_2(%arg0: i32) -> (i32, i32) {
    %c0_i32 = arith.constant 0 : i32
    %c0_i32_0 = arith.constant 0 : i32
    %c0_i32_1 = arith.constant 0 : i32
    return %c0_i32, %c0_i32_0 : i32, i32
  }
  func.func @transform_3(%arg0: i32) -> (i32, i32) {
    %c0_i32 = arith.constant 0 : i32
    %c0_i32_0 = arith.constant 0 : i32
    %c0_i32_1 = arith.constant 0 : i32
    return %c0_i32, %c0_i32_0 : i32, i32
  }
  func.func @transform_4(%arg0: i32) -> (i32, i32) {
    %c0_i32 = arith.constant 0 : i32
    %c0_i32_0 = arith.constant 0 : i32
    %c0_i32_1 = arith.constant 0 : i32
    return %c0_i32, %c0_i32_0 : i32, i32
  }
  func.func @transform_5(%arg0: i32) -> (i32, i32) {
    %c0_i32 = arith.constant 0 : i32
    %c0_i32_0 = arith.constant 0 : i32
    %c0_i32_1 = arith.constant 0 : i32
    return %c0_i32, %c0_i32_0 : i32, i32
  }
  func.func @transform_6(%arg0: i32) -> (i32, i32) {
    %c0_i32 = arith.constant 0 : i32
    %c0_i32_0 = arith.constant 0 : i32
    %c0_i32_1 = arith.constant 0 : i32
    return %c0_i32, %c0_i32_0 : i32, i32
  }
  func.func @transform_7(%arg0: i32) -> (i32, i32) {
    %c0_i32 = arith.constant 0 : i32
    %c0_i32_0 = arith.constant 0 : i32
    return %arg0, %c0_i32 : i32, i32
  }
}

</mosaic_0001>

<bundles_post_ra>
// kernel: tpu_custom_call.1
= control target key start
LH: loop header
LB: loop body
LE: loop exit
PB: predicated region body
PF: predicated region fallthrough
CT: control target
= control target key end

     0   :  { %vm31_vm0 = vcmask 261120   ;;  %s524_s0 = inlined_call_operand.vmem [shape: f32[16,32], index: 0, kind: input, shape index: {}]   ;;  %s525_s1 = inlined_call_operand.vmem [shape: f32[1,32], index: 1, kind: input, shape index: {}]   ;;  %s526_s2 = inlined_call_operand.vmem [shape: f32[1,32], index: 2, kind: input, shape index: {}]   ;;  %s527_s3 = inlined_call_operand.vmem [shape: f32[32,64], index: 3, kind: input, shape index: {}]   ;;  %s528_s4 = inlined_call_operand.vmem [shape: f32[1,64], index: 4, kind: input, shape index: {}]   ;;  %s529_s5 = inlined_call_operand.vmem [shape: f32[64,32], index: 5, kind: input, shape index: {}]   ;;  %s530_s6 = inlined_call_operand.vmem [shape: f32[1,32], index: 6, kind: input, shape index: {}]   ;;  %s531_s7 = inlined_call_operand.hbm [shape: f32[16,32], index: 7, kind: output, shape index: {}]  }
   0x1   :  { %v27_v0 = vld [vmem:[%s524_s0] sm:$0xff]  ;;  %v28_v1 = vld [vmem:[%s524_s0 + $0x8] sm:$0xff] }
   0x2   :  { %12 = vsyncpa [#allocation3], 0  ;;  %v32_v2 = vsel %vm31_vm0, %v27_v0, 0.0  ;;  %v35_v3 = vsel %vm31_vm0, %v28_v1, 0.0  ;;  %v75_v14 = vld [vmem:[%s527_s3] sm:$0xff]  ;;  %v76_v15 = vld [vmem:[%s527_s3 + $0x8] sm:$0xff] }
   0x3   :  { %33 = vadd.xlane.f32.xlu0 %v32_v2  ;;  %v77_v16 = vld [vmem:[%s527_s3 + $0x10] sm:$0xff]  ;;  %v348_v17 = vpack.c.bf16 %v76_v15, %v75_v14  ;;  %v78_v18 = vld [vmem:[%s527_s3 + $0x18] sm:$0xff]  ;;  %v294_v27 = vld [vmem:[%s525_s1] ss:$0 sm:$0xff]  ;;  %vm192_vm1 = vcmask 523264   ;;  %s407_s30 = smov [#allocation2]  }
   0x4   :  { %v352_v19 = vpack.c.bf16 %v78_v18, %v77_v16  ;;  %v295_v29 = vld [vmem:[%s526_s2] ss:$0 sm:$0xff]  ;;  %v178_v37 = vld [vmem:[%s529_s5 + $0x8] sm:$0xff]  ;;  %v179_v39 = vld [vmem:[%s529_s5 + $0x10] sm:$0xff]  ;;  %s283_s8 = sshll.u32 %s407_s30, 4  ;;  %s284_s8 = int_to_ptr.vmem [resolvable:$true] %s283_s8 }
   0x5   :  { %349 = vmatprep.subr.bf16.mxu0 %v348_v17  ;;  %v177_v36 = vld [vmem:[%s529_s5] sm:$0xff]  ;;  %v180_v40 = vld [vmem:[%s529_s5 + $0x18] sm:$0xff]  ;;  %v182_v43 = vld [vmem:[%s529_s5 + $0x28] sm:$0xff]  ;;  %s383_s9 = scalar_lea.vmem %s284_s8, 256  ;;  %p388_p1 = scmp.lt.s32.totalorder %s284_s8, %s284_s8 }
   0x6   :  { %351 = vmatpush3.bf16.msra.mxu0 %v348_v17  ;;  %v356_v38 = vpack.c.bf16 %v178_v37, %v177_v36  ;;  %v360_v41 = vpack.c.bf16 %v180_v40, %v179_v39  ;;  %v181_v42 = vld [vmem:[%s529_s5 + $0x20] sm:$0xff]  ;;  %v183_v45 = vld [vmem:[%s529_s5 + $0x30] sm:$0xff]  ;;  %v184_v46 = vld [vmem:[%s529_s5 + $0x38] sm:$0xff]  ;;  %p384_p0 = scmp.ne.s32.totalorder %s284_s8, %s383_s9  ;;  %p389_p2 = scmp.lt.s32.totalorder %s383_s9, %s383_s9 }
   0x7   :  { %36 = vadd.xlane.f32.xlu0 %v35_v3  ;;  %353 = vmatprep.subr.bf16.mxu0 %v352_v19  ;;  %v364_v44 = vpack.c.bf16 %v182_v43, %v181_v42  ;;  %v368_v47 = vpack.c.bf16 %v184_v46, %v183_v45  ;;  %v296_v48 = vld [vmem:[%s528_s4] ss:$0 sm:$0xff] }
   0x8   :  { %357 = vmatprep.subr.bf16.mxu1 %v356_v38  ;;  %v299_v63 = vld [vmem:[%s530_s6] ss:$0 sm:$0xff]  ;;  %p390_p3 = por %p389_p2, %p388_p1 }
   0x9   :  { %359 = vmatpush3.bf16.msra.mxu1 %v356_v38 }
   0xa   :  { %355 = vmatpush3.bf16.msra.mxu0 %v352_v19  ;;  %361 = vmatprep.subr.bf16.mxu1 %v360_v41  ;;  %p391_p4 = pnand %p390_p3, %p384_p0 }
   0xd   :  { %363 = vmatpush3.bf16.msra.mxu1 %v360_v41 }
   0xe   :  { %365 = vmatprep.subr.bf16.mxu1 %v364_v44 }
  0x11   :  { %367 = vmatpush3.bf16.msra.mxu1 %v364_v44 }
  0x12   :  { %369 = vmatprep.subr.bf16.mxu1 %v368_v47 }
  0x15   :  { %371 = vmatpush3.bf16.msra.mxu1 %v368_v47 }
  0x90   :  { %v34_v4 = vpop.xlane.xlu0 %33 }
  0x91   :  { %v39_v5 = vmul.f32 0.03125, %v34_v4 }
  0x93   :  { %v41_v6 = vsub.f32 %v27_v0, %v39_v5 }
  0x94   :  { %v37_v7 = vpop.xlane.xlu0 %36 }
  0x95   :  { %v40_v8 = vmul.f32 0.03125, %v37_v7  ;;  %v43_v9 = vmul.f32 %v41_v6, %v41_v6 }
  0x97   :  { %v42_v10 = vsub.f32 %v28_v1, %v40_v8  ;;  %v45_v11 = vsel %vm31_vm0, %v43_v9, 0.0 }
  0x98   :  { %46 = vadd.xlane.f32.xlu1 %v45_v11 }
  0x99   :  { %v44_v12 = vmul.f32 %v42_v10, %v42_v10 }
  0x9b   :  { %v48_v13 = vsel %vm31_vm0, %v44_v12, 0.0 }
  0x9c   :  { %49 = vadd.xlane.f32.xlu1 %v48_v13 }
 0x125   :  { %v47_v20 = vpop.xlane.xlu1 %46 }
 0x126   :  { %v51_v21 = vmul.f32 0.03125, %v47_v20 }
 0x128   :  { %v53_v22 = vadd.f32 1e-05, %v51_v21 }
 0x129   :  { %v50_v23 = vpop.xlane.xlu1 %49 }
 0x12a   :  { %375 = vrsqrt.f32 %v53_v22  ;;  %v52_v24 = vmul.f32 0.03125, %v50_v23 }
 0x12c   :  { %v54_v25 = vadd.f32 1e-05, %v52_v24 }
 0x12e   :  { %377 = vrsqrt.f32 %v54_v25 }
 0x134   :  { %v376_v26 = vpop.eup %375 }
 0x135   :  { %v57_v28 = vmul.f32 %v376_v26, %v41_v6 }
 0x137   :  { %v65_v30 = vmul.f32 %v294_v27, %v57_v28 }
 0x138   :  { %v378_v31 = vpop.eup %377 }
 0x139   :  { %v58_v32 = vmul.f32 %v378_v31, %v42_v10  ;;  %v73_v33 = vadd.f32 %v295_v29, %v65_v30 }
 0x13b   :  { %v66_v34 = vmul.f32 %v294_v27, %v58_v32  ;;  %326 = vmatprep.mubr.msk.f32.mxu0 %vm31_vm0, %v73_v33 }
 0x13d   :  { %v74_v35 = vadd.f32 %v295_v29, %v66_v34 }
 0x13f   :  { %327 = vmatmul.mubr.msk.f32.vlgmr.msra.gmra.mrb[0].mxu0 %vm31_vm0, %v74_v35 }
 0x212   :  { %v328_v49 = vpop.f32.mrb[0].mxu0 }
 0x213   :  { %v164_v50 = vadd.f32 %v328_v49, %v296_v48  ;;  %v158_v51 = vpop.f32.mrb[1].mxu0 }
 0x214   :  { %v159_v52 = vadd.f32 %v296_v48, %v158_v51 }
 0x215   :  { %v170_v53 = vmul.f32 0.70710677, %v164_v50  ;;  %v168_v60 = vmul.f32 0.5, %v164_v50 }
 0x216   :  { %v169_v54 = vmul.f32 0.70710677, %v159_v52  ;;  %v167_v58 = vmul.f32 0.5, %v159_v52 }
 0x217   :  { %379 = verf.f32 %v170_v53 }
 0x218   :  { %381 = verf.f32 %v169_v54 }
 0x221   :  { %v380_v55 = vpop.eup %379 }
 0x222   :  { %v382_v56 = vpop.eup %381  ;;  %v174_v57 = vadd.f32 1.0, %v380_v55 }
 0x223   :  { %v173_v59 = vadd.f32 1.0, %v382_v56 }
 0x224   :  { %v176_v62 = vmul.f32 %v174_v57, %v168_v60 }
 0x225   :  { %v175_v61 = vmul.f32 %v173_v59, %v167_v58 }
 0x227   :  { %345 = vmatprep.mubr.msk.f32.mxu1 %vm192_vm1, %v175_v61 }
 0x228   :  { %346 = vmatmul.mubr.msk.f32.vlgmr.msra.gmra.mrb[0].mxu1 %vm192_vm1, %v176_v62 }
 0x2fb   :  { %v347_v0 = vpop.f32.mrb[0].mxu1 }
 0x2fc   :  { %v271_v1 = vadd.f32 %v347_v0, %v299_v63  ;;  %v265_v2 = vpop.f32.mrb[1].mxu1 }
 0x2fd   :  { %v266_v3 = vadd.f32 %v299_v63, %v265_v2 }
 0x2fe   :  { %v275_v4 = vadd.f32 %v271_v1, %v74_v35 }
 0x2ff   :  { %v274_v5 = vadd.f32 %v266_v3, %v73_v33 }
 0x300   :  { %277 = vst.msk [vmem:[#allocation2 + $0x8] sm:$0xff] %vm31_vm0, %v275_v4 }
 0x301   :  { %276 = vst.msk [vmem:[#allocation2] sm:$0xff] %vm31_vm0, %v274_v5 }
 0x302   :  { %394 = shalt.err (!%p391_p4)
}
 0x303   :  { %s395_s11 = scalar_lea.hbm %s531_s7, 256 }
 0x304   :  { %p396_p5 = scmp.ne.s32.totalorder %s531_s7, %s395_s11  ;;  %p399_p6 = scmp.lt.u32.totalorder %s395_s11, %s531_s7 }
 0x306   :  { %p401_p7 = pnand %p399_p6, %p396_p5 }
 0x308   :  { %404 = shalt.err (!%p401_p7)
}
 0x309   :  { %s408_s15 = smov 128   ;;  %s409_s16 = smov 8  }
 0x30a   :  { %289 = dma.vmem_to_hbm [thread:$0]  %s284_s8, 256, %s531_s7, [#allocation3], %s408_s15, %s408_s15, %s409_s16  }
 0x30b   :  { %405 = dma.done.wait [#allocation3], 256  }
 0x30c   :  { %406 = vsyncadd [#allocation3], 4294967040 }
 0x30d   :  { %293 = vsyncpa [#allocation3], 1 }

</bundles_post_ra>
